<compile_context>
chip_gen: v5e
topology: v5e:2x2
jax: 0.10.0
libtpu: 0.0.40
codegen_flags: <defaults>
</compile_context>

<pallas_src>
import jax
import jax.numpy as jnp
from jax.experimental import pallas as pl
from jax.experimental.pallas import tpu as pltpu

N_STATE = 27
N_ACTION = 5
N_OPPO_ACTION = 5
IN_DIM = N_STATE + N_ACTION + N_OPPO_ACTION   # 37
H1 = 64
H2 = 32
OUT_DIM = N_STATE + 1                          # 28


def _mlp_kernel(x_ref, w1_ref, b1_ref, w2_ref, b2_ref, w3_ref, b3_ref, o_ref):
    # One batch tile per grid step; matmuls on the MXU, tanh on the EUP/VPU.
    # Keep the three matmuls back-to-back (no barriers) so the LLO scheduler
    # overlaps MXU drain with the tanh EUP pushes.
    x = x_ref[...]
    h1 = jnp.tanh(
        jnp.dot(x, w1_ref[...], preferred_element_type=jnp.float32) + b1_ref[...]
    )
    h2 = jnp.tanh(
        jnp.dot(h1, w2_ref[...], preferred_element_type=jnp.float32) + b2_ref[...]
    )
    o_ref[...] = jnp.tanh(
        jnp.dot(h2, w3_ref[...], preferred_element_type=jnp.float32) + b3_ref[...]
    )


def _round_up(n, m):
    return ((n + m - 1) // m) * m


def env_simple_keepaway_forward(x, params, *, tm=1024):
    """x: [B, 37] float32  ->  [B, 28] float32"""
    w1, b1, w2, b2, w3, b3 = params
    B = x.shape[0]

    # Tile size: large (ideally >=512) for HBM-roofline pipelining, but never
    # larger than the (8-aligned) batch, and always a multiple of 8 (f32 sublane).
    tm_eff = max(8, _round_up(min(tm, _round_up(B, 8)), 8))
    b_pad = _round_up(B, tm_eff)
    if b_pad != B:
        x = jnp.pad(x, ((0, b_pad - B), (0, 0)))
    grid = (b_pad // tm_eff,)

    def resident(shape):
        # Full-array block with constant index_map: DMA'd once, stays in VMEM.
        return pl.BlockSpec(shape, lambda i: (0, 0))

    in_specs = [
        pl.BlockSpec((tm_eff, IN_DIM), lambda i: (i, 0)),   # x: batch-tiled
        resident(w1.shape), resident(b1.shape),
        resident(w2.shape), resident(b2.shape),
        resident(w3.shape), resident(b3.shape),
    ]
    out_specs = pl.BlockSpec((tm_eff, OUT_DIM), lambda i: (i, 0))

    weight_bytes = 4 * (IN_DIM * H1 + H1 + H1 * H2 + H2 + H2 * OUT_DIM + OUT_DIM)
    cost = pl.CostEstimate(
        flops=2 * b_pad * (IN_DIM * H1 + H1 * H2 + H2 * OUT_DIM),
        transcendentals=b_pad * (H1 + H2 + OUT_DIM),
        bytes_accessed=b_pad * (IN_DIM + OUT_DIM) * 4 + weight_bytes,
    )

    out = pl.pallas_call(
        _mlp_kernel,
        out_shape=jax.ShapeDtypeStruct((b_pad, OUT_DIM), jnp.float32),
        grid=grid,
        in_specs=in_specs,
        out_specs=out_specs,
        compiler_params=pltpu.CompilerParams(dimension_semantics=("parallel",)),
        cost_estimate=cost,
    )(x, w1, b1, w2, b2, w3, b3)

    return out[:B]


def init_params(key):
    """Deterministic init mimicking nn.Linear default (uniform +-1/sqrt(fan_in)).

    Weights are stored as [in, out] (transposed vs. PyTorch's [out, in])."""
    def linear(key, fan_in, fan_out):
        kw, kb = jax.random.split(key)
        bound = 1.0 / jnp.sqrt(jnp.float32(fan_in))
        w = jax.random.uniform(kw, (fan_in, fan_out), jnp.float32, -bound, bound)
        b = jax.random.uniform(kb, (1, fan_out), jnp.float32, -bound, bound)
        return w, b

    k1, k2, k3 = jax.random.split(key, 3)
    w1, b1 = linear(k1, IN_DIM, H1)
    w2, b2 = linear(k2, H1, H2)
    w3, b3 = linear(k3, H2, OUT_DIM)
    return w1, b1, w2, b2, w3, b3


def _reference(x, params):
    w1, b1, w2, b2, w3, b3 = params
    h1 = jnp.tanh(x @ w1 + b1)
    h2 = jnp.tanh(h1 @ w2 + b2)
    return jnp.tanh(h2 @ w3 + b3)


if __name__ == "__main__":
    key = jax.random.PRNGKey(0)
    k_params, k_x1, k_x2 = jax.random.split(key, 3)

    params = init_params(k_params)

    # Small batch of concatenated [state | action one-hot | oppo action one-hot]
    B1 = 8
    x1 = jax.random.normal(k_x1, (B1, IN_DIM), jnp.float32)
    out1 = jax.block_until_ready(env_simple_keepaway_forward(x1, params))
    assert out1.shape == (B1, OUT_DIM)
    assert jnp.allclose(out1, _reference(x1, params), atol=1e-5, rtol=1e-5)

    # Larger, ragged batch: exercises grid > 1, resident weights, pad+slice path.
    B2 = 300
    x2 = jax.random.normal(k_x2, (B2, IN_DIM), jnp.float32)
    out2 = jax.block_until_ready(env_simple_keepaway_forward(x2, params, tm=128))
    assert out2.shape == (B2, OUT_DIM)
    assert jnp.allclose(out2, _reference(x2, params), atol=1e-5, rtol=1e-5)

    print("KERNEL_OK")
</pallas_src>

<mosaic_0001>
module attributes {stable_mosaic.version = 11 : i64} {
  func.func @_mlp_kernel(%arg0: i32, %arg1: memref<8x37xf32, #tpu.memory_space<vmem>>, %arg2: memref<37x64xf32, #tpu.memory_space<vmem>>, %arg3: memref<1x64xf32, #tpu.memory_space<vmem>>, %arg4: memref<64x32xf32, #tpu.memory_space<vmem>>, %arg5: memref<1x32xf32, #tpu.memory_space<vmem>>, %arg6: memref<32x28xf32, #tpu.memory_space<vmem>>, %arg7: memref<1x28xf32, #tpu.memory_space<vmem>>, %arg8: memref<8x28xf32, #tpu.memory_space<vmem>>) attributes {dimension_semantics = [#tpu.dimension_semantics<parallel>], iteration_bounds = array<i64: 1>, scalar_prefetch = 0 : i64, scratch_operands = 0 : i64, tpu.core_type = #tpu.core_type<tc>, window_params = [{transform_indices = @transform_0, window_bounds = array<i64: 8, 37>}, {pipeline_mode = #tpu.pipeline_mode<synchronous>, transform_indices = @transform_1, window_bounds = array<i64: 37, 64>}, {pipeline_mode = #tpu.pipeline_mode<synchronous>, transform_indices = @transform_2, window_bounds = array<i64: 1, 64>}, {pipeline_mode = #tpu.pipeline_mode<synchronous>, transform_indices = @transform_3, window_bounds = array<i64: 64, 32>}, {pipeline_mode = #tpu.pipeline_mode<synchronous>, transform_indices = @transform_4, window_bounds = array<i64: 1, 32>}, {pipeline_mode = #tpu.pipeline_mode<synchronous>, transform_indices = @transform_5, window_bounds = array<i64: 32, 28>}, {pipeline_mode = #tpu.pipeline_mode<synchronous>, transform_indices = @transform_6, window_bounds = array<i64: 1, 28>}, {transform_indices = @transform_7, window_bounds = array<i64: 8, 28>}]} {
    %c0 = arith.constant 0 : index
    %c0_0 = arith.constant 0 : index
    %0 = vector.load %arg1[%c0, %c0_0] : memref<8x37xf32, #tpu.memory_space<vmem>>, vector<8x37xf32>
    %c0_1 = arith.constant 0 : index
    %c0_2 = arith.constant 0 : index
    %1 = vector.load %arg2[%c0_1, %c0_2] : memref<37x64xf32, #tpu.memory_space<vmem>>, vector<37x64xf32>
    %cst = arith.constant dense<0.000000e+00> : vector<8x64xf32>
    %2 = tpu.matmul %0, %1, %cst {dimension_numbers = #tpu.dot_dimension_numbers<[1], [0], [0], [1], [0, 0, 1, 1], [], []>} : vector<8x37xf32>, vector<37x64xf32>, vector<8x64xf32> -> vector<8x64xf32>
    %c0_3 = arith.constant 0 : index
    %c0_4 = arith.constant 0 : index
    %3 = vector.load %arg3[%c0_3, %c0_4] : memref<1x64xf32, #tpu.memory_space<vmem>>, vector<1x64xf32>
    %4 = vector.broadcast %3 : vector<1x64xf32> to vector<8x64xf32>
    %5 = arith.addf %2, %4 : vector<8x64xf32>
    %6 = math.tanh %5 : vector<8x64xf32>
    %c0_5 = arith.constant 0 : index
    %c0_6 = arith.constant 0 : index
    %7 = vector.load %arg4[%c0_5, %c0_6] : memref<64x32xf32, #tpu.memory_space<vmem>>, vector<64x32xf32>
    %cst_7 = arith.constant dense<0.000000e+00> : vector<8x32xf32>
    %8 = tpu.matmul %6, %7, %cst_7 {dimension_numbers = #tpu.dot_dimension_numbers<[1], [0], [0], [1], [0, 0, 1, 1], [], []>} : vector<8x64xf32>, vector<64x32xf32>, vector<8x32xf32> -> vector<8x32xf32>
    %c0_8 = arith.constant 0 : index
    %c0_9 = arith.constant 0 : index
    %9 = vector.load %arg5[%c0_8, %c0_9] : memref<1x32xf32, #tpu.memory_space<vmem>>, vector<1x32xf32>
    %10 = vector.broadcast %9 : vector<1x32xf32> to vector<8x32xf32>
    %11 = arith.addf %8, %10 : vector<8x32xf32>
    %12 = math.tanh %11 : vector<8x32xf32>
    %c0_10 = arith.constant 0 : index
    %c0_11 = arith.constant 0 : index
    %13 = vector.load %arg6[%c0_10, %c0_11] : memref<32x28xf32, #tpu.memory_space<vmem>>, vector<32x28xf32>
    %cst_12 = arith.constant dense<0.000000e+00> : vector<8x28xf32>
    %14 = tpu.matmul %12, %13, %cst_12 {dimension_numbers = #tpu.dot_dimension_numbers<[1], [0], [0], [1], [0, 0, 1, 1], [], []>} : vector<8x32xf32>, vector<32x28xf32>, vector<8x28xf32> -> vector<8x28xf32>
    %c0_13 = arith.constant 0 : index
    %c0_14 = arith.constant 0 : index
    %15 = vector.load %arg7[%c0_13, %c0_14] : memref<1x28xf32, #tpu.memory_space<vmem>>, vector<1x28xf32>
    %16 = vector.broadcast %15 : vector<1x28xf32> to vector<8x28xf32>
    %17 = arith.addf %14, %16 : vector<8x28xf32>
    %18 = math.tanh %17 : vector<8x28xf32>
    %c0_15 = arith.constant 0 : index
    %c0_16 = arith.constant 0 : index
    %19 = vector.load %arg8[%c0_15, %c0_16] : memref<8x28xf32, #tpu.memory_space<vmem>>, vector<8x28xf32>
    tpu.vector_store %arg8[%c0_15, %c0_16], %18 {strides = array<i32>} : memref<8x28xf32, #tpu.memory_space<vmem>>, vector<8x28xf32>,
    return
  }
  func.func @transform_0(%arg0: i32) -> (i32, i32) {
    %c0_i32 = arith.constant 0 : i32
    %c0_i32_0 = arith.constant 0 : i32
    return %arg0, %c0_i32 : i32, i32
  }
  func.func @transform_1(%arg0: i32) -> (i32, i32) {
    %c0_i32 = arith.constant 0 : i32
    %c0_i32_0 = arith.constant 0 : i32
    %c0_i32_1 = arith.constant 0 : i32
    return %c0_i32, %c0_i32_0 : i32, i32
  }
  func.func @transform_2(%arg0: i32) -> (i32, i32) {
    %c0_i32 = arith.constant 0 : i32
    %c0_i32_0 = arith.constant 0 : i32
    %c0_i32_1 = arith.constant 0 : i32
    return %c0_i32, %c0_i32_0 : i32, i32
  }
  func.func @transform_3(%arg0: i32) -> (i32, i32) {
    %c0_i32 = arith.constant 0 : i32
    %c0_i32_0 = arith.constant 0 : i32
    %c0_i32_1 = arith.constant 0 : i32
    return %c0_i32, %c0_i32_0 : i32, i32
  }
  func.func @transform_4(%arg0: i32) -> (i32, i32) {
    %c0_i32 = arith.constant 0 : i32
    %c0_i32_0 = arith.constant 0 : i32
    %c0_i32_1 = arith.constant 0 : i32
    return %c0_i32, %c0_i32_0 : i32, i32
  }
  func.func @transform_5(%arg0: i32) -> (i32, i32) {
    %c0_i32 = arith.constant 0 : i32
    %c0_i32_0 = arith.constant 0 : i32
    %c0_i32_1 = arith.constant 0 : i32
    return %c0_i32, %c0_i32_0 : i32, i32
  }
  func.func @transform_6(%arg0: i32) -> (i32, i32) {
    %c0_i32 = arith.constant 0 : i32
    %c0_i32_0 = arith.constant 0 : i32
    %c0_i32_1 = arith.constant 0 : i32
    return %c0_i32, %c0_i32_0 : i32, i32
  }
  func.func @transform_7(%arg0: i32) -> (i32, i32) {
    %c0_i32 = arith.constant 0 : i32
    %c0_i32_0 = arith.constant 0 : i32
    return %arg0, %c0_i32 : i32, i32
  }
}

</mosaic_0001>

<bundles_post_ra>
// kernel: tpu_custom_call.1
= control target key start
LH: loop header
LB: loop body
LE: loop exit
PB: predicated region body
PF: predicated region fallthrough
CT: control target
= control target key end

     0   :  { %vm41_vm0 = vcmask 1044480   ;;  %s301_s0 = inlined_call_operand.vmem [shape: f32[8,37], index: 0, kind: input, shape index: {}]   ;;  %s302_s1 = inlined_call_operand.vmem [shape: f32[37,64], index: 1, kind: input, shape index: {}]   ;;  %s303_s2 = inlined_call_operand.vmem [shape: f32[1,64], index: 2, kind: input, shape index: {}]   ;;  %s304_s3 = inlined_call_operand.vmem [shape: f32[64,32], index: 3, kind: input, shape index: {}]   ;;  %s305_s4 = inlined_call_operand.vmem [shape: f32[1,32], index: 4, kind: input, shape index: {}]   ;;  %s306_s5 = inlined_call_operand.vmem [shape: f32[32,28], index: 5, kind: input, shape index: {}]   ;;  %s307_s6 = inlined_call_operand.vmem [shape: f32[1,28], index: 6, kind: input, shape index: {}]   ;;  %s308_s7 = inlined_call_operand.hbm [shape: f32[8,28], index: 7, kind: output, shape index: {}]  }
   0x1   :  { %v32_v0 = vld [vmem:[%s302_s1 + $0x20] sm:$0x1f]  ;;  %v31_v1 = vld [vmem:[%s302_s1 + $0x18] sm:$0xff]  ;;  %v30_v2 = vld [vmem:[%s302_s1 + $0x10] sm:$0xff] }
   0x2   :  { %154 = vmatpush.msk.msra.mxu0 %vm41_vm0, %v32_v0  ;;  %v73_v3 = vld [vmem:[%s304_s3 + $0x38] sm:$0xff]  ;;  %v72_v4 = vld [vmem:[%s304_s3 + $0x30] sm:$0xff]  ;;  %v29_v5 = vld [vmem:[%s302_s1 + $0x8] sm:$0xff] }
   0x3   :  { %90 = vmatpush.msra.mxu1 %v73_v3  ;;  %v71_v6 = vld [vmem:[%s304_s3 + $0x28] sm:$0xff] }
   0x4   :  { %57 = vmatpush.msra.mxu0 %v31_v1 }
   0x5   :  { %12 = vsyncpa [#allocation3], 0  ;;  %91 = vmatpush.msra.mxu1 %v72_v4  ;;  %v28_v7 = vld [vmem:[%s302_s1] sm:$0xff]  ;;  %vm37_vm1 = vcmask 302080   ;;  %v69_v10 = vld [vmem:[%s304_s3 + $0x18] sm:$0xff]  ;;  %vm78_vm2 = vcmask 523264  }
   0x6   :  { %58 = vmatpush.msra.mxu0 %v30_v2  ;;  %v27_v8 = vld [vmem:[%s301_s0] sm:$0xff]  ;;  %v68_v11 = vld [vmem:[%s304_s3 + $0x10] sm:$0xff]  ;;  %v67_v12 = vld [vmem:[%s304_s3 + $0x8] sm:$0xff]  ;;  %vm111_vm3 = vcmask 261120   ;;  %s145_s19 = sshll.u32 %s308_s7, 4  ;;  %vm136_vm4 = vcmask 228352   ;;  %s146_s19 = int_to_ptr.hbm [resolvable:$true] %s145_s19 }
   0x7   :  { %92 = vmatpush.msra.mxu1 %v71_v6  ;;  %v70_v9 = vld [vmem:[%s304_s3 + $0x20] sm:$0xff]  ;;  %v106_v18 = vld [vmem:[%s306_s5 + $0x18] sm:$0xff]  ;;  %v105_v19 = vld [vmem:[%s306_s5 + $0x10] sm:$0xff] }
   0x8   :  { %59 = vmatpush.msra.mxu0 %v29_v5  ;;  %v66_v13 = vld [vmem:[%s304_s3] sm:$0xff]  ;;  %127 = vmatpush.msra.mxu2 %v106_v18  ;;  %v104_v20 = vld [vmem:[%s306_s5 + $0x8] sm:$0xff] }
   0x9   :  { %93 = vmatpush.msra.mxu1 %v70_v9  ;;  %v159_v14 = vld [vmem:[%s303_s2] ss:$0 sm:$0xff] }
   0xa   :  { %60 = vmatpush.msra.mxu0 %v28_v7  ;;  %128 = vmatpush.msra.mxu2 %v105_v19  ;;  %v103_v21 = vld [vmem:[%s306_s5] sm:$0xff]  ;;  %s194_s5 = smov [#allocation2]  }
   0xb   :  { %155 = vmatmul.msk.f32.vlgmr.msra.gmra.mxu0 %vm37_vm1, %v27_v8  ;;  %94 = vmatpush.msra.mxu1 %v69_v10  ;;  %v160_v22 = vld [vmem:[%s305_s4] ss:$0 sm:$0xff]  ;;  %s143_s16 = sshll.u32 %s194_s5, 4  ;;  %s144_s16 = int_to_ptr.vmem [resolvable:$true] %s143_s16 }
   0xc   :  { %129 = vmatpush.msra.mxu2 %v104_v20  ;;  %v161_v26 = vld [vmem:[%s307_s6] ss:$0 sm:$0xff] }
   0xd   :  { %95 = vmatpush.msra.mxu1 %v68_v11 }
   0xe   :  { %130 = vmatpush.msra.mxu2 %v103_v21 }
   0xf   :  { %96 = vmatpush.msra.mxu1 %v67_v12 }
  0x11   :  { %97 = vmatpush.msra.mxu1 %v66_v13 }
  0x88   :  { %v62_v15 = vpop.f32.mrf.mxu0 }
  0x89   :  { %v63_v16 = vadd.f32 %v159_v14, %v62_v15 }
  0x8b   :  { %162 = vtanh.f32 %v63_v16 }
  0x91   :  { %v163_v17 = vpop.eup %162 }
  0x92   :  { %156 = vmatmul.msk.f32.vlgmr.msra.gmra.mxu1 %vm78_vm2, %v163_v17 }
 0x10f   :  { %v99_v23 = vpop.f32.mrf.mxu1 }
 0x110   :  { %v100_v24 = vadd.f32 %v160_v22, %v99_v23 }
 0x112   :  { %164 = vtanh.f32 %v100_v24 }
 0x118   :  { %v165_v25 = vpop.eup %164 }
 0x119   :  { %157 = vmatmul.msk.f32.vlgmr.msra.gmra.mxu2 %vm111_vm3, %v165_v25 }
 0x19c   :  { %v132_v27 = vpop.f32.mrf.mxu2 }
 0x19d   :  { %v133_v28 = vadd.f32 %v161_v26, %v132_v27 }
 0x19f   :  { %166 = vtanh.f32 %v133_v28 }
 0x1a5   :  { %v167_v29 = vpop.eup %166 }
 0x1a6   :  { %137 = vst.msk [vmem:[#allocation2] sm:$0xff] %vm136_vm4, %v167_v29 }
 0x1a7   :  { %148 = dma.vmem_to_hbm [thread:$0]  %s144_s16, 128, %s146_s19, [#allocation3]  }
 0x1a8   :  { %192 = dma.done.wait [#allocation3], 128  }
 0x1a9   :  { %193 = vsyncadd [#allocation3], 4294967168 }
 0x1aa   :  { %153 = vsyncpa [#allocation3], 1 }

</bundles_post_ra>
